<compile_context>
chip_gen: v5e
topology: v5e:2x2
jax: 0.10.0
libtpu: 0.0.40
codegen_flags: <defaults>
</compile_context>

<pallas_src>
import functools

import jax
import jax.numpy as jnp
from jax import lax
from jax.experimental import pallas as pl
from jax.experimental.pallas import tpu as pltpu


def _round_up(x, m):
    return (x + m - 1) // m * m


def _tpu_generation():
    """Best-effort TPU generation (4/5/6/7); None if undetectable."""
    try:
        kind = jax.devices()[0].device_kind.lower()
    except Exception:
        return None
    if "v7" in kind or "7x" in kind:
        return 7
    if "v6" in kind:
        return 6
    if "v5" in kind:
        return 5
    if "v4" in kind:
        return 4
    return None


def _gcn_kernel(x_ref, adj_ref, wt_ref, b_ref, o_ref, *scratch, acc_in_out):
    # x_ref   : (TB, TK, Dp)  source-node k-tile of (padded, pre-cast) inputs
    # adj_ref : (TB, TM, TK)  adjacency tile (output rows m, source cols k)
    # wt_ref  : (Dp, Dp)      padded W^T (in, out) — transposed once in wrapper
    # b_ref   : (1, Dp)       padded bias, kept in f32
    # o_ref   : (TB, TM, Dp)  resident output block (constant across k axis)
    # scratch : optional f32 accumulator (only when o_ref is not f32)
    k = pl.program_id(2)

    TB, TK, Dp = x_ref.shape

    # fc(inputs) = inputs @ W^T + b.  W^T is already materialized, so this is a
    # plain K-major MXU matmul; bias add stays in f32.
    x2 = x_ref[...].reshape(TB * TK, Dp)
    h = jnp.dot(x2, wt_ref[...], preferred_element_type=jnp.float32)
    h = h + b_ref[...]
    h = h.reshape(TB, TK, Dp).astype(adj_ref.dtype)

    # Aggregation partial: adj[:, m_tile, k_tile] @ h_k_tile  (batched over TB).
    y_part = lax.dot_general(
        adj_ref[...], h,
        dimension_numbers=(((2,), (1,)), ((0,), (0,))),
        preferred_element_type=jnp.float32,
    )

    if acc_in_out:
        # f32 output: accumulate straight into the resident output block.
        @pl.when(k == 0)
        def _():
            o_ref[...] = jnp.zeros_like(o_ref)

        o_ref[...] += y_part
    else:
        acc_ref = scratch[0]

        @pl.when(k == 0)
        def _():
            acc_ref[...] = jnp.zeros_like(acc_ref)

        acc_ref[...] += y_part

        @pl.when(k == pl.num_programs(2) - 1)
        def _():
            o_ref[...] = acc_ref[...].astype(o_ref.dtype)


def graph_conv_net(inputs, adj_mat, weight, bias, *, compute_dtype=jnp.bfloat16):
    """inputs: (B, N, dim), adj_mat: (B, N, N), weight: (dim, dim) (out, in),
    bias: (dim,).  Returns (B, N, dim) = adj_mat @ (inputs @ W^T + b).

    compute_dtype controls the MXU feed dtype (f32 accumulation always);
    bf16 (default) halves HBM traffic and runs the MXU at full rate."""
    B, N, dim = inputs.shape
    out_dtype = inputs.dtype
    gen = _tpu_generation()

    # ------------------------------------------------------------------ tiling
    Dp = _round_up(dim, 128)              # lane-dense feature axis
    Np = _round_up(N, 128)                # lane-dense node axis (adjacency cols)

    # Reduction (source-node) tile: 256 matches the 256-deep MXU on v6e/v7x.
    tk_pref = 256 if (gen is None or gen >= 6) else 128
    TK = tk_pref if (Np >= tk_pref and Np % tk_pref == 0) else 128

    in_eb = jnp.dtype(compute_dtype).itemsize
    out_eb = jnp.dtype(out_dtype).itemsize
    acc_in_out = jnp.dtype(out_dtype) == jnp.dtype(jnp.float32)

    # Generation-aware scoped-VMEM limit (conservative if gen is unknown).
    if gen is not None and gen in (4, 5, 6):
        vmem_limit = 96 * 1024 * 1024     # 128 MiB physical on these gens
    else:
        vmem_limit = 48 * 1024 * 1024     # v7x: 64 MiB physical per TC
    budget = vmem_limit - 6 * 1024 * 1024  # headroom for internal scratch

    def vmem_bytes(tb, tm):
        dbl = 2                                       # BlockSpec double-buffering
        total = dbl * (tb * TK * Dp * in_eb           # x tile
                       + tb * tm * TK * in_eb         # adj tile
                       + Dp * Dp * in_eb              # weight (constant map)
                       + Dp * 4                       # bias (f32)
                       + tb * tm * Dp * out_eb)       # resident output tile
        if not acc_in_out:
            total += tb * tm * Dp * 4                 # f32 accumulator scratch
        return total

    # Row tile TM caps the resident output/accumulator footprint (critical on
    # v7x); batch block TB amortizes the ~0.35 us/step grid overhead.  Prefer
    # the largest TM (less redundant fc recompute), then the largest TB.
    tm_candidates = sorted(
        {t for t in (Np, 1024, 512, 256, 128) if t <= Np and Np % t == 0},
        reverse=True)
    TB, TM = 1, tm_candidates[-1]
    for tm in tm_candidates:
        best_tb = 0
        for tb in range(1, min(B, 32) + 1):
            if vmem_bytes(tb, tm) <= budget:
                best_tb = tb
        if best_tb >= 1:
            TB, TM = best_tb, tm
            break
    # TODO(synk): if even (TB=1, TM=128) exceeds the budget (very large dim),
    # the fc would also need feature tiling; not reachable at these shapes.

    Bp = _round_up(B, TB)                 # pad batch so TB need not divide B

    # ---------------------------------------------------------- pad + pre-cast
    # Zero padding keeps the math exact: padded adjacency columns are zero, so
    # the bias picked up by padded source rows never reaches the output, and
    # padded feature lanes of W^T / bias stay zero.
    x_p = jnp.pad(inputs, ((0, Bp - B), (0, Np - N), (0, Dp - dim)))
    adj_p = jnp.pad(adj_mat, ((0, Bp - B), (0, Np - N), (0, Np - N)))
    wt_p = jnp.pad(weight.T, ((0, Dp - dim), (0, Dp - dim)))   # W^T built once
    b_p = jnp.pad(bias, (0, Dp - dim)).astype(jnp.float32).reshape(1, Dp)

    x_p = x_p.astype(compute_dtype)       # pre-cast in wrapper, not per step
    adj_p = adj_p.astype(compute_dtype)
    wt_p = wt_p.astype(compute_dtype)

    grid = (Bp // TB, Np // TM, Np // TK)

    flops = 2 * B * N * dim * dim + 2 * B * N * N * dim
    bytes_accessed = (x_p.size * in_eb + adj_p.size * in_eb
                      + wt_p.size * in_eb + b_p.size * 4
                      + Bp * Np * Dp * out_eb)

    kernel = functools.partial(_gcn_kernel, acc_in_out=acc_in_out)
    scratch_shapes = [] if acc_in_out else [pltpu.VMEM((TB, TM, Dp), jnp.float32)]

    out_p = pl.pallas_call(
        kernel,
        out_shape=jax.ShapeDtypeStruct((Bp, Np, Dp), out_dtype),
        grid_spec=pltpu.PrefetchScalarGridSpec(
            num_scalar_prefetch=0,
            grid=grid,
            in_specs=[
                pl.BlockSpec((TB, TK, Dp), lambda b, m, k: (b, k, 0)),   # x
                pl.BlockSpec((TB, TM, TK), lambda b, m, k: (b, m, k)),   # adj
                pl.BlockSpec((Dp, Dp), lambda b, m, k: (0, 0)),          # W^T
                pl.BlockSpec((1, Dp), lambda b, m, k: (0, 0)),           # bias
            ],
            out_specs=pl.BlockSpec((TB, TM, Dp), lambda b, m, k: (b, m, 0)),
            scratch_shapes=scratch_shapes,
        ),
        compiler_params=pltpu.CompilerParams(
            dimension_semantics=("parallel", "parallel", "arbitrary"),
            vmem_limit_bytes=vmem_limit,
        ),
        cost_estimate=pl.CostEstimate(
            flops=flops, transcendentals=0, bytes_accessed=bytes_accessed),
    )(x_p, adj_p, wt_p, b_p)

    return out_p[:B, :N, :dim]


if __name__ == "__main__":
    B, N, dim = 2, 8, 32

    key = jax.random.PRNGKey(0)
    k_x, k_adj, k_w, k_b = jax.random.split(key, 4)

    inputs = jax.random.normal(k_x, (B, N, dim), dtype=jnp.float32)
    adj_mat = jax.random.uniform(k_adj, (B, N, N), dtype=jnp.float32)

    # Deterministic nn.Linear-style init: U(-1/sqrt(dim), 1/sqrt(dim))
    bound = dim ** -0.5
    weight = jax.random.uniform(k_w, (dim, dim), dtype=jnp.float32,
                                minval=-bound, maxval=bound)
    bias = jax.random.uniform(k_b, (dim,), dtype=jnp.float32,
                              minval=-bound, maxval=bound)

    # Pure-JAX reference
    ref = jnp.matmul(adj_mat, jnp.matmul(inputs, weight.T) + bias)

    # f32 MXU feed: bit-tight check.
    out_f32 = jax.block_until_ready(
        graph_conv_net(inputs, adj_mat, weight, bias, compute_dtype=jnp.float32))
    assert out_f32.shape == ref.shape, "shape mismatch vs reference (f32)"
    assert jnp.allclose(out_f32, ref, atol=1e-4, rtol=1e-4), "mismatch (f32 path)"

    # Default bf16 MXU feed (f32 accumulate): dtype-dependent tolerance.
    out_bf16 = jax.block_until_ready(graph_conv_net(inputs, adj_mat, weight, bias))
    assert out_bf16.shape == ref.shape, "shape mismatch vs reference (bf16)"
    assert jnp.allclose(out_bf16, ref, atol=5e-2, rtol=5e-2), "mismatch (bf16 path)"

    print("KERNEL_OK")
</pallas_src>

<mosaic_0001>
module attributes {stable_mosaic.version = 11 : i64} {
  func.func @_gcn_kernel(%arg0: i32, %arg1: i32, %arg2: i32, %arg3: memref<2x128x128xf32, #tpu.memory_space<vmem>>, %arg4: memref<2x128x128xf32, #tpu.memory_space<vmem>>, %arg5: memref<128x128xf32, #tpu.memory_space<vmem>>, %arg6: memref<1x128xf32, #tpu.memory_space<vmem>>, %arg7: memref<2x128x128xf32, #tpu.memory_space<vmem>>) attributes {dimension_semantics = [#tpu.dimension_semantics<parallel>, #tpu.dimension_semantics<parallel>, #tpu.dimension_semantics<arbitrary>], iteration_bounds = array<i64: 1, 1, 1>, scalar_prefetch = 0 : i64, scratch_operands = 0 : i64, tpu.core_type = #tpu.core_type<tc>, window_params = [{transform_indices = @transform_0, window_bounds = array<i64: 2, 128, 128>}, {transform_indices = @transform_1, window_bounds = array<i64: 2, 128, 128>}, {pipeline_mode = #tpu.pipeline_mode<synchronous>, transform_indices = @transform_2, window_bounds = array<i64: 128, 128>}, {pipeline_mode = #tpu.pipeline_mode<synchronous>, transform_indices = @transform_3, window_bounds = array<i64: 1, 128>}, {transform_indices = @transform_4, window_bounds = array<i64: 2, 128, 128>}]} {
    %c0 = arith.constant 0 : index
    %c0_0 = arith.constant 0 : index
    %c0_1 = arith.constant 0 : index
    %0 = vector.load %arg3[%c0, %c0_0, %c0_1] : memref<2x128x128xf32, #tpu.memory_space<vmem>>, vector<2x128x128xf32>
    %1 = vector.shape_cast %0 : vector<2x128x128xf32> to vector<256x128xf32>
    %c0_2 = arith.constant 0 : index
    %c0_3 = arith.constant 0 : index
    %2 = vector.load %arg5[%c0_2, %c0_3] : memref<128x128xf32, #tpu.memory_space<vmem>>, vector<128x128xf32>
    %cst = arith.constant dense<0.000000e+00> : vector<256x128xf32>
    %3 = tpu.matmul %1, %2, %cst {dimension_numbers = #tpu.dot_dimension_numbers<[1], [0], [0], [1], [0, 0, 1, 1], [], []>} : vector<256x128xf32>, vector<128x128xf32>, vector<256x128xf32> -> vector<256x128xf32>
    %c0_4 = arith.constant 0 : index
    %c0_5 = arith.constant 0 : index
    %4 = vector.load %arg6[%c0_4, %c0_5] : memref<1x128xf32, #tpu.memory_space<vmem>>, vector<1x128xf32>
    %5 = vector.broadcast %4 : vector<1x128xf32> to vector<256x128xf32>
    %6 = arith.addf %3, %5 : vector<256x128xf32>
    %7 = vector.shape_cast %6 : vector<256x128xf32> to vector<2x128x128xf32>
    %c0_6 = arith.constant 0 : index
    %c0_7 = arith.constant 0 : index
    %c0_8 = arith.constant 0 : index
    %8 = vector.load %arg4[%c0_6, %c0_7, %c0_8] : memref<2x128x128xf32, #tpu.memory_space<vmem>>, vector<2x128x128xf32>
    %cst_9 = arith.constant dense<0.000000e+00> : vector<2x128x128xf32>
    %9 = tpu.matmul %8, %7, %cst_9 {dimension_numbers = #tpu.dot_dimension_numbers<[2], [1], [1], [2], [0, 0, 0, 1, 1, 2], [0], [0]>} : vector<2x128x128xf32>, vector<2x128x128xf32>, vector<2x128x128xf32> -> vector<2x128x128xf32>
    %c0_i32 = arith.constant 0 : i32
    %10 = arith.cmpi eq, %arg2, %c0_i32 : i32
    %11 = arith.extui %10 : i1 to i32
    %c0_i32_10 = arith.constant 0 : i32
    %12 = arith.cmpi ne, %11, %c0_i32_10 : i32
    scf.if %12 {
      %cst_17 = arith.constant 0.000000e+00 : f32
      %16 = vector.broadcast %cst_17 : f32 to vector<2x128x128xf32>
      %c0_18 = arith.constant 0 : index
      %c0_19 = arith.constant 0 : index
      %c0_20 = arith.constant 0 : index
      %17 = vector.load %arg7[%c0_18, %c0_19, %c0_20] : memref<2x128x128xf32, #tpu.memory_space<vmem>>, vector<2x128x128xf32>
      tpu.vector_store %arg7[%c0_18, %c0_19, %c0_20], %16 {strides = array<i32>} : memref<2x128x128xf32, #tpu.memory_space<vmem>>, vector<2x128x128xf32>,
    } else {
    }
    %c0_11 = arith.constant 0 : index
    %c0_12 = arith.constant 0 : index
    %c0_13 = arith.constant 0 : index
    %13 = vector.load %arg7[%c0_11, %c0_12, %c0_13] : memref<2x128x128xf32, #tpu.memory_space<vmem>>, vector<2x128x128xf32>
    %14 = arith.addf %13, %9 : vector<2x128x128xf32>
    %c0_14 = arith.constant 0 : index
    %c0_15 = arith.constant 0 : index
    %c0_16 = arith.constant 0 : index
    %15 = vector.load %arg7[%c0_14, %c0_15, %c0_16] : memref<2x128x128xf32, #tpu.memory_space<vmem>>, vector<2x128x128xf32>
    tpu.vector_store %arg7[%c0_14, %c0_15, %c0_16], %14 {strides = array<i32>} : memref<2x128x128xf32, #tpu.memory_space<vmem>>, vector<2x128x128xf32>,
    return
  }
  func.func @transform_0(%arg0: i32, %arg1: i32, %arg2: i32) -> (i32, i32, i32) {
    %c0_i32 = arith.constant 0 : i32
    %c0_i32_0 = arith.constant 0 : i32
    return %arg0, %arg2, %c0_i32 : i32, i32, i32
  }
  func.func @transform_1(%arg0: i32, %arg1: i32, %arg2: i32) -> (i32, i32, i32) {
    %c0_i32 = arith.constant 0 : i32
    return %arg0, %arg1, %arg2 : i32, i32, i32
  }
  func.func @transform_2(%arg0: i32, %arg1: i32, %arg2: i32) -> (i32, i32) {
    %c0_i32 = arith.constant 0 : i32
    %c0_i32_0 = arith.constant 0 : i32
    %c0_i32_1 = arith.constant 0 : i32
    return %c0_i32, %c0_i32_0 : i32, i32
  }
  func.func @transform_3(%arg0: i32, %arg1: i32, %arg2: i32) -> (i32, i32) {
    %c0_i32 = arith.constant 0 : i32
    %c0_i32_0 = arith.constant 0 : i32
    %c0_i32_1 = arith.constant 0 : i32
    return %c0_i32, %c0_i32_0 : i32, i32
  }
  func.func @transform_4(%arg0: i32, %arg1: i32, %arg2: i32) -> (i32, i32, i32) {
    %c0_i32 = arith.constant 0 : i32
    %c0_i32_0 = arith.constant 0 : i32
    return %arg0, %arg1, %c0_i32 : i32, i32, i32
  }
}

</mosaic_0001>

<bundles_post_ra>
// kernel: tpu_custom_call.1
= control target key start
LH: loop header
LB: loop body
LE: loop exit
PB: predicated region body
PF: predicated region fallthrough
CT: control target
= control target key end

     0   :  { %9 = vsyncpa [#allocation3], 0  ;;  %s792_s0 = inlined_call_operand.hbm [shape: f32[2,128,128], index: 0, kind: input, shape index: {}]   ;;  %s793_s1 = inlined_call_operand.hbm [shape: f32[2,128,128], index: 1, kind: input, shape index: {}]   ;;  %s794_s2 = inlined_call_operand.hbm [shape: f32[128,128], index: 2, kind: input, shape index: {}]   ;;  %s795_s3 = inlined_call_operand.vmem [shape: f32[1,128], index: 3, kind: input, shape index: {}]   ;;  %s796_s4 = inlined_call_operand.hbm [shape: f32[2,128,128], index: 4, kind: output, shape index: {}]  }
   0x1   :  { %10 = vsyncpa [#allocation6], 0 }
   0x2   :  { %11 = vsyncpa [#allocation4], 0  ;;  %s29_s17 = sshll.u32 %s793_s1, 4  ;;  %s670_s18 = smov [#allocation5]   ;;  %s30_s17 = int_to_ptr.hbm [resolvable:$true] %s29_s17 }
   0x3   :  { %s31_s19 = sshll.u32 %s670_s18, 4  ;;  %s16_s22 = sshll.u32 %s792_s0, 4  ;;  %s32_s19 = int_to_ptr.vmem [resolvable:$true] %s31_s19  ;;  %s17_s22 = int_to_ptr.hbm [resolvable:$true] %s16_s22 }
   0x4   :  { %s671_s23 = smov 128   ;;  %s672_s24 = smov 8  }
   0x5   :  { %37 = dma.hbm_to_vmem [thread:$0]  %s30_s17, 4096, %s32_s19, [#allocation6], %s671_s23, %s671_s23, %s672_s24  }
   0x6   :  { %s673_s25 = smov [#allocation2]   ;;  %s42_s1 = sshll.u32 %s794_s2, 4  ;;  %s43_s1 = int_to_ptr.hbm [resolvable:$true] %s42_s1 }
   0x7   :  { %s18_s26 = sshll.u32 %s673_s25, 4  ;;  %s674_s0 = smov [#allocation7]   ;;  %s19_s26 = int_to_ptr.vmem [resolvable:$true] %s18_s26 }
   0x8   :  { %24 = dma.hbm_to_vmem [thread:$0]  %s17_s22, 4096, %s19_s26, [#allocation3], %s671_s23, %s671_s23, %s672_s24  }
   0x9   :  { %s44_s29 = sshll.u32 %s674_s0, 4  ;;  %s45_s29 = int_to_ptr.vmem [resolvable:$true] %s44_s29 }
   0xa   :  { %50 = dma.hbm_to_vmem [thread:$0]  %s43_s1, 2048, %s45_s29, [#allocation6], %s671_s23, %s671_s23, %s672_s24  }
   0xb   :  { %664 = dma.done.wait [#allocation3], 4096  }
   0xc   :  { %665 = vsyncadd [#allocation3], 4294963200 }
   0xd   :  { %666 = dma.done.wait [#allocation6], 6144  }
   0xe   :  { %667 = vsyncadd [#allocation6], 4294961152  ;;  %v112_v0 = vld [vmem:[#allocation7 + $0x78] sm:$0xff]  ;;  %v111_v1 = vld [vmem:[#allocation7 + $0x70] sm:$0xff]  ;;  %s530_s8 = sshll.u32 %s796_s4, 4  ;;  %s531_s8 = int_to_ptr.hbm [resolvable:$true] %s530_s8 }
   0xf   :  { %117 = vmatpush.msra.mxu0 %v112_v0  ;;  %544 = vmatpush.msra.mxu3 %v112_v0  ;;  %v110_v2 = vld [vmem:[#allocation7 + $0x68] sm:$0xff]  ;;  %v109_v3 = vld [vmem:[#allocation7 + $0x60] sm:$0xff]  ;;  %v108_v4 = vld [vmem:[#allocation7 + $0x58] sm:$0xff] }
  0x10   :  { %v107_v5 = vld [vmem:[#allocation7 + $0x50] sm:$0xff]  ;;  %v106_v6 = vld [vmem:[#allocation7 + $0x48] sm:$0xff]  ;;  %v105_v7 = vld [vmem:[#allocation7 + $0x40] sm:$0xff] }
  0x11   :  { %118 = vmatpush.msra.mxu0 %v111_v1  ;;  %545 = vmatpush.msra.mxu3 %v111_v1  ;;  %v104_v8 = vld [vmem:[#allocation7 + $0x38] sm:$0xff]  ;;  %v103_v9 = vld [vmem:[#allocation7 + $0x30] sm:$0xff]  ;;  %v102_v10 = vld [vmem:[#allocation7 + $0x28] sm:$0xff] }
  0x12   :  { %v101_v11 = vld [vmem:[#allocation7 + $0x20] sm:$0xff]  ;;  %v100_v12 = vld [vmem:[#allocation7 + $0x18] sm:$0xff]  ;;  %v99_v13 = vld [vmem:[#allocation7 + $0x10] sm:$0xff] }
  0x13   :  { %119 = vmatpush.msra.mxu0 %v110_v2  ;;  %546 = vmatpush.msra.mxu3 %v110_v2  ;;  %v98_v14 = vld [vmem:[#allocation7 + $0x8] sm:$0xff]  ;;  %v97_v15 = vld [vmem:[#allocation7] sm:$0xff]  ;;  %v67_v20 = vld [vmem:[#allocation2 + $0x10] sm:$0xff] }
  0x14   :  { %v65_v16 = vld [vmem:[#allocation2] sm:$0xff]  ;;  %v66_v18 = vld [vmem:[#allocation2 + $0x8] sm:$0xff]  ;;  %v83_v21 = vld [vmem:[#allocation2 + $0x90] sm:$0xff] }
  0x15   :  { %120 = vmatpush.msra.mxu0 %v109_v3  ;;  %547 = vmatpush.msra.mxu3 %v109_v3  ;;  %v81_v17 = vld [vmem:[#allocation2 + $0x80] sm:$0xff]  ;;  %v82_v19 = vld [vmem:[#allocation2 + $0x88] sm:$0xff]  ;;  %v68_v22 = vld [vmem:[#allocation2 + $0x18] sm:$0xff] }
  0x16   :  { %v84_v23 = vld [vmem:[#allocation2 + $0x98] sm:$0xff]  ;;  %v69_v24 = vld [vmem:[#allocation2 + $0x20] sm:$0xff]  ;;  %v70_v26 = vld [vmem:[#allocation2 + $0x28] sm:$0xff] }
  0x17   :  { %121 = vmatpush.msra.mxu0 %v108_v4  ;;  %548 = vmatpush.msra.mxu3 %v108_v4  ;;  %v85_v25 = vld [vmem:[#allocation2 + $0xa0] sm:$0xff]  ;;  %v86_v27 = vld [vmem:[#allocation2 + $0xa8] sm:$0xff]  ;;  %v71_v28 = vld [vmem:[#allocation2 + $0x30] sm:$0xff] }
  0x18   :  { %v87_v29 = vld [vmem:[#allocation2 + $0xb0] sm:$0xff]  ;;  %v72_v30 = vld [vmem:[#allocation2 + $0x38] sm:$0xff]  ;;  %v73_v32 = vld [vmem:[#allocation2 + $0x40] sm:$0xff] }
  0x19   :  { %122 = vmatpush.msra.mxu0 %v107_v5  ;;  %549 = vmatpush.msra.mxu3 %v107_v5  ;;  %v88_v31 = vld [vmem:[#allocation2 + $0xb8] sm:$0xff]  ;;  %v89_v33 = vld [vmem:[#allocation2 + $0xc0] sm:$0xff]  ;;  %v74_v34 = vld [vmem:[#allocation2 + $0x48] sm:$0xff] }
  0x1a   :  { %v90_v35 = vld [vmem:[#allocation2 + $0xc8] sm:$0xff]  ;;  %v75_v36 = vld [vmem:[#allocation2 + $0x50] sm:$0xff]  ;;  %v76_v38 = vld [vmem:[#allocation2 + $0x58] sm:$0xff] }
  0x1b   :  { %123 = vmatpush.msra.mxu0 %v106_v6  ;;  %550 = vmatpush.msra.mxu3 %v106_v6  ;;  %v91_v37 = vld [vmem:[#allocation2 + $0xd0] sm:$0xff]  ;;  %v92_v39 = vld [vmem:[#allocation2 + $0xd8] sm:$0xff]  ;;  %v77_v40 = vld [vmem:[#allocation2 + $0x60] sm:$0xff] }
  0x1c   :  { %v93_v41 = vld [vmem:[#allocation2 + $0xe0] sm:$0xff]  ;;  %v78_v42 = vld [vmem:[#allocation2 + $0x68] sm:$0xff]  ;;  %v79_v44 = vld [vmem:[#allocation2 + $0x70] sm:$0xff] }
  0x1d   :  { %124 = vmatpush.msra.mxu0 %v105_v7  ;;  %551 = vmatpush.msra.mxu3 %v105_v7  ;;  %v94_v43 = vld [vmem:[#allocation2 + $0xe8] sm:$0xff]  ;;  %v95_v45 = vld [vmem:[#allocation2 + $0xf0] sm:$0xff]  ;;  %v80_v46 = vld [vmem:[#allocation2 + $0x78] sm:$0xff] }
  0x1e   :  { %v96_v47 = vld [vmem:[#allocation2 + $0xf8] sm:$0xff] }
  0x1f   :  { %125 = vmatpush.msra.mxu0 %v104_v8  ;;  %552 = vmatpush.msra.mxu3 %v104_v8 }
  0x21   :  { %126 = vmatpush.msra.mxu0 %v103_v9  ;;  %553 = vmatpush.msra.mxu3 %v103_v9 }
  0x23   :  { %127 = vmatpush.msra.mxu0 %v102_v10  ;;  %554 = vmatpush.msra.mxu3 %v102_v10 }
  0x25   :  { %128 = vmatpush.msra.mxu0 %v101_v11  ;;  %555 = vmatpush.msra.mxu3 %v101_v11 }
  0x27   :  { %129 = vmatpush.msra.mxu0 %v100_v12  ;;  %556 = vmatpush.msra.mxu3 %v100_v12 }
  0x29   :  { %130 = vmatpush.msra.mxu0 %v99_v13  ;;  %557 = vmatpush.msra.mxu3 %v99_v13 }
  0x2b   :  { %131 = vmatpush.msra.mxu0 %v98_v14  ;;  %558 = vmatpush.msra.mxu3 %v98_v14  ;;  %v742_v14 = vld [vmem:[%s795_s3] ss:$0 sm:$0xff]  ;;  %s675_s3 = smov [#allocation8]  }
  0x2c   :  { %s528_s5 = sshll.u32 %s675_s3, 4  ;;  %s529_s5 = int_to_ptr.vmem [resolvable:$true] %s528_s5 }
  0x2d   :  { %132 = vmatpush.msra.mxu0 %v97_v15  ;;  %559 = vmatpush.msra.mxu3 %v97_v15 }
  0x2e   :  { %133 = vmatmul.f32.vlgmr.msra.gmra.mxu0 %v65_v16  ;;  %181 = vmatmul.f32.vlgmr.msra.gmra.mxu3 %v81_v17 }
  0x36   :  { %136 = vmatmul.f32.gmra.mxu0 %v66_v18  ;;  %184 = vmatmul.f32.gmra.mxu3 %v82_v19 }
  0x3e   :  { %139 = vmatmul.f32.gmra.mxu0 %v67_v20  ;;  %187 = vmatmul.f32.gmra.mxu3 %v83_v21 }
  0x46   :  { %142 = vmatmul.f32.gmra.mxu0 %v68_v22  ;;  %190 = vmatmul.f32.gmra.mxu3 %v84_v23 }
  0x4e   :  { %145 = vmatmul.f32.gmra.mxu0 %v69_v24  ;;  %193 = vmatmul.f32.gmra.mxu3 %v85_v25 }
  0x56   :  { %148 = vmatmul.f32.gmra.mxu0 %v70_v26  ;;  %196 = vmatmul.f32.gmra.mxu3 %v86_v27 }
  0x5e   :  { %151 = vmatmul.f32.gmra.mxu0 %v71_v28  ;;  %199 = vmatmul.f32.gmra.mxu3 %v87_v29 }
  0x66   :  { %154 = vmatmul.f32.gmra.mxu0 %v72_v30  ;;  %202 = vmatmul.f32.gmra.mxu3 %v88_v31 }
  0x6e   :  { %157 = vmatmul.f32.gmra.mxu0 %v73_v32  ;;  %205 = vmatmul.f32.gmra.mxu3 %v89_v33 }
  0x76   :  { %160 = vmatmul.f32.gmra.mxu0 %v74_v34  ;;  %208 = vmatmul.f32.gmra.mxu3 %v90_v35 }
  0x7e   :  { %163 = vmatmul.f32.gmra.mxu0 %v75_v36  ;;  %211 = vmatmul.f32.gmra.mxu3 %v91_v37 }
  0x86   :  { %166 = vmatmul.f32.gmra.mxu0 %v76_v38  ;;  %214 = vmatmul.f32.gmra.mxu3 %v92_v39 }
  0x8e   :  { %169 = vmatmul.f32.gmra.mxu0 %v77_v40  ;;  %217 = vmatmul.f32.gmra.mxu3 %v93_v41 }
  0x96   :  { %172 = vmatmul.f32.gmra.mxu0 %v78_v42  ;;  %220 = vmatmul.f32.gmra.mxu3 %v94_v43 }
  0x9e   :  { %175 = vmatmul.f32.gmra.mxu0 %v79_v44  ;;  %223 = vmatmul.f32.gmra.mxu3 %v95_v45 }
  0xa6   :  { %178 = vmatmul.f32.gmra.mxu0 %v80_v46  ;;  %226 = vmatmul.f32.gmra.mxu3 %v96_v47  ;;  %v230_v46 = vld [vmem:[#allocation5] sm:$0xff] }
  0xab   :  { %v719_v48 = vpop.f32.mrf.mxu0 }
  0xac   :  { %v135_v44 = vadd.f32 %v742_v14, %v719_v48  ;;  %v246_v48 = vld [vmem:[#allocation5 + $0x80] sm:$0xff] }
  0xb1   :  { %v721_v49 = vpop.f32.mrf.mxu3 }
  0xb3   :  { %v723_v50 = vpop.f32.mrf.mxu0 }
  0xb4   :  { %v138_v42 = vadd.f32 %v742_v14, %v723_v50 }
  0xb9   :  { %v725_v51 = vpop.f32.mrf.mxu3 }
  0xba   :  { %v186_v50 = vadd.f32 %v742_v14, %v725_v51  ;;  %v234_v51 = vld [vmem:[#allocation5 + $0x20] sm:$0xff] }
  0xbb   :  { %v727_v52 = vpop.f32.mrf.mxu0 }
  0xbc   :  { %v141_v40 = vadd.f32 %v742_v14, %v727_v52  ;;  %v183_v52 = vadd.f32 %v742_v14, %v721_v49  ;;  %v235_v49 = vld [vmem:[#allocation5 + $0x28] sm:$0xff] }
  0xc1   :  { %v729_v53 = vpop.f32.mrf.mxu3 }
  0xc2   :  { %v189_v47 = vadd.f32 %v742_v14, %v729_v53  ;;  %v248_v53 = vld [vmem:[#allocation5 + $0x90] sm:$0xff] }
  0xc3   :  { %v731_v54 = vpop.f32.mrf.mxu0 }
  0xc4   :  { %v144_v38 = vadd.f32 %v742_v14, %v731_v54  ;;  %v231_v54 = vld [vmem:[#allocation5 + $0x8] sm:$0xff] }
  0xc9   :  { %v733_v55 = vpop.f32.mrf.mxu3 }
  0xca   :  { %v192_v45 = vadd.f32 %v742_v14, %v733_v55  ;;  %v247_v55 = vld [vmem:[#allocation5 + $0x88] sm:$0xff] }
  0xcb   :  { %v146_v56 = vpop.f32.mrf.mxu0 }
  0xcc   :  { %v147_v36 = vadd.f32 %v742_v14, %v146_v56  ;;  %v232_v56 = vld [vmem:[#allocation5 + $0x10] sm:$0xff] }
  0xd1   :  { %v735_v57 = vpop.f32.mrf.mxu3 }
  0xd2   :  { %v195_v43 = vadd.f32 %v742_v14, %v735_v57  ;;  %v233_v57 = vld [vmem:[#allocation5 + $0x18] sm:$0xff] }
  0xd3   :  { %v149_v58 = vpop.f32.mrf.mxu0 }
  0xd4   :  { %v150_v34 = vadd.f32 %v742_v14, %v149_v58  ;;  %v249_v58 = vld [vmem:[#allocation5 + $0x98] sm:$0xff] }
  0xd9   :  { %v737_v59 = vpop.f32.mrf.mxu3 }
  0xda   :  { %v198_v41 = vadd.f32 %v742_v14, %v737_v59  ;;  %v250_v59 = vld [vmem:[#allocation5 + $0xa0] sm:$0xff] }
  0xdb   :  { %v152_v60 = vpop.f32.mrf.mxu0 }
  0xdc   :  { %v153_v32 = vadd.f32 %v742_v14, %v152_v60  ;;  %v251_v60 = vld [vmem:[#allocation5 + $0xa8] sm:$0xff] }
  0xe1   :  { %v200_v61 = vpop.f32.mrf.mxu3 }
  0xe2   :  { %v201_v39 = vadd.f32 %v742_v14, %v200_v61  ;;  %v236_v61 = vld [vmem:[#allocation5 + $0x30] sm:$0xff] }
  0xe3   :  { %v155_v62 = vpop.f32.mrf.mxu0 }
  0xe4   :  { %v156_v30 = vadd.f32 %v742_v14, %v155_v62  ;;  %v252_v62 = vld [vmem:[#allocation5 + $0xb0] sm:$0xff] }
  0xe9   :  { %v203_v63 = vpop.f32.mrf.mxu3 }
  0xea   :  { %v204_v37 = vadd.f32 %v742_v14, %v203_v63  ;;  %v237_v63 = vld [vmem:[#allocation5 + $0x38] sm:$0xff] }
  0xeb   :  { %v158_v0 = vpop.f32.mrf.mxu0 }
  0xec   :  { %v159_v28 = vadd.f32 %v742_v14, %v158_v0  ;;  %v253_v0 = vld [vmem:[#allocation5 + $0xb8] sm:$0xff] }
  0xf1   :  { %v206_v1 = vpop.f32.mrf.mxu3 }
  0xf2   :  { %v207_v35 = vadd.f32 %v742_v14, %v206_v1  ;;  %v238_v1 = vld [vmem:[#allocation5 + $0x40] sm:$0xff] }
  0xf3   :  { %v161_v2 = vpop.f32.mrf.mxu0 }
  0xf4   :  { %v162_v26 = vadd.f32 %v742_v14, %v161_v2  ;;  %v254_v2 = vld [vmem:[#allocation5 + $0xc0] sm:$0xff] }
  0xf9   :  { %v209_v3 = vpop.f32.mrf.mxu3 }
  0xfa   :  { %v210_v33 = vadd.f32 %v742_v14, %v209_v3  ;;  %v239_v3 = vld [vmem:[#allocation5 + $0x48] sm:$0xff] }
  0xfb   :  { %v164_v4 = vpop.f32.mrf.mxu0 }
  0xfc   :  { %v165_v24 = vadd.f32 %v742_v14, %v164_v4  ;;  %v255_v4 = vld [vmem:[#allocation5 + $0xc8] sm:$0xff] }
 0x101   :  { %v212_v5 = vpop.f32.mrf.mxu3 }
 0x102   :  { %v213_v31 = vadd.f32 %v742_v14, %v212_v5  ;;  %v240_v5 = vld [vmem:[#allocation5 + $0x50] sm:$0xff] }
 0x103   :  { %v167_v6 = vpop.f32.mrf.mxu0 }
 0x104   :  { %v168_v22 = vadd.f32 %v742_v14, %v167_v6  ;;  %v256_v6 = vld [vmem:[#allocation5 + $0xd0] sm:$0xff] }
 0x109   :  { %v215_v7 = vpop.f32.mrf.mxu3 }
 0x10a   :  { %v216_v29 = vadd.f32 %v742_v14, %v215_v7  ;;  %v241_v7 = vld [vmem:[#allocation5 + $0x58] sm:$0xff] }
 0x10b   :  { %v170_v8 = vpop.f32.mrf.mxu0 }
 0x10c   :  { %v171_v20 = vadd.f32 %v742_v14, %v170_v8  ;;  %v257_v8 = vld [vmem:[#allocation5 + $0xd8] sm:$0xff] }
 0x111   :  { %v218_v9 = vpop.f32.mrf.mxu3 }
 0x112   :  { %v219_v27 = vadd.f32 %v742_v14, %v218_v9  ;;  %v242_v9 = vld [vmem:[#allocation5 + $0x60] sm:$0xff] }
 0x113   :  { %v173_v10 = vpop.f32.mrf.mxu0 }
 0x114   :  { %v174_v18 = vadd.f32 %v742_v14, %v173_v10  ;;  %v258_v10 = vld [vmem:[#allocation5 + $0xe0] sm:$0xff] }
 0x119   :  { %v221_v11 = vpop.f32.mrf.mxu3 }
 0x11a   :  { %v222_v25 = vadd.f32 %v742_v14, %v221_v11  ;;  %v243_v11 = vld [vmem:[#allocation5 + $0x68] sm:$0xff] }
 0x11b   :  { %v176_v12 = vpop.f32.mrf.mxu0 }
 0x11c   :  { %v177_v16 = vadd.f32 %v742_v14, %v176_v12  ;;  %v259_v12 = vld [vmem:[#allocation5 + $0xe8] sm:$0xff] }
 0x121   :  { %v224_v13 = vpop.f32.mrf.mxu3 }
 0x122   :  { %v225_v23 = vadd.f32 %v742_v14, %v224_v13  ;;  %v244_v13 = vld [vmem:[#allocation5 + $0x70] sm:$0xff] }
 0x123   :  { %v179_v15 = vpop.f32.mrf.mxu0 }
 0x124   :  { %v180_v17 = vadd.f32 %v742_v14, %v179_v15  ;;  %v245_v15 = vld [vmem:[#allocation5 + $0x78] sm:$0xff] }
 0x126   :  { %262 = vmatpush.msra.mxu1 %v180_v17 }
 0x128   :  { %263 = vmatpush.msra.mxu1 %v177_v16  ;;  %v261_v16 = vld [vmem:[#allocation5 + $0xf8] sm:$0xff] }
 0x129   :  { %v227_v19 = vpop.f32.mrf.mxu3 }
 0x12a   :  { %264 = vmatpush.msra.mxu1 %v174_v18  ;;  %v228_v21 = vadd.f32 %v742_v14, %v227_v19  ;;  %v260_v14 = vld [vmem:[#allocation5 + $0xf0] sm:$0xff] }
 0x12c   :  { %265 = vmatpush.msra.mxu1 %v171_v20  ;;  %327 = vmatpush.msra.mxu2 %v228_v21 }
 0x12e   :  { %266 = vmatpush.msra.mxu1 %v168_v22  ;;  %328 = vmatpush.msra.mxu2 %v225_v23 }
 0x130   :  { %267 = vmatpush.msra.mxu1 %v165_v24  ;;  %329 = vmatpush.msra.mxu2 %v222_v25 }
 0x132   :  { %268 = vmatpush.msra.mxu1 %v162_v26  ;;  %330 = vmatpush.msra.mxu2 %v219_v27 }
 0x134   :  { %269 = vmatpush.msra.mxu1 %v159_v28  ;;  %331 = vmatpush.msra.mxu2 %v216_v29 }
 0x136   :  { %270 = vmatpush.msra.mxu1 %v156_v30  ;;  %332 = vmatpush.msra.mxu2 %v213_v31 }
 0x138   :  { %271 = vmatpush.msra.mxu1 %v153_v32  ;;  %333 = vmatpush.msra.mxu2 %v210_v33 }
 0x13a   :  { %272 = vmatpush.msra.mxu1 %v150_v34  ;;  %334 = vmatpush.msra.mxu2 %v207_v35 }
 0x13c   :  { %273 = vmatpush.msra.mxu1 %v147_v36  ;;  %335 = vmatpush.msra.mxu2 %v204_v37 }
 0x13e   :  { %274 = vmatpush.msra.mxu1 %v144_v38  ;;  %336 = vmatpush.msra.mxu2 %v201_v39 }
 0x140   :  { %275 = vmatpush.msra.mxu1 %v141_v40  ;;  %337 = vmatpush.msra.mxu2 %v198_v41 }
 0x142   :  { %276 = vmatpush.msra.mxu1 %v138_v42  ;;  %338 = vmatpush.msra.mxu2 %v195_v43 }
 0x144   :  { %277 = vmatpush.msra.mxu1 %v135_v44  ;;  %339 = vmatpush.msra.mxu2 %v192_v45 }
 0x145   :  { %278 = vmatmul.f32.vlgmr.msra.gmra.mxu1 %v230_v46 }
 0x146   :  { %340 = vmatpush.msra.mxu2 %v189_v47 }
 0x148   :  { %341 = vmatpush.msra.mxu2 %v186_v50 }
 0x14a   :  { %342 = vmatpush.msra.mxu2 %v183_v52 }
 0x14b   :  { %343 = vmatmul.f32.vlgmr.msra.gmra.mxu2 %v246_v48 }
 0x14d   :  { %281 = vmatmul.f32.gmra.mxu1 %v231_v54 }
 0x153   :  { %346 = vmatmul.f32.gmra.mxu2 %v247_v55 }
 0x155   :  { %284 = vmatmul.f32.gmra.mxu1 %v232_v56 }
 0x15b   :  { %349 = vmatmul.f32.gmra.mxu2 %v248_v53 }
 0x15d   :  { %287 = vmatmul.f32.gmra.mxu1 %v233_v57 }
 0x163   :  { %352 = vmatmul.f32.gmra.mxu2 %v249_v58 }
 0x165   :  { %290 = vmatmul.f32.gmra.mxu1 %v234_v51 }
 0x16b   :  { %355 = vmatmul.f32.gmra.mxu2 %v250_v59 }
 0x16d   :  { %293 = vmatmul.f32.gmra.mxu1 %v235_v49 }
 0x173   :  { %358 = vmatmul.f32.gmra.mxu2 %v251_v60 }
 0x175   :  { %296 = vmatmul.f32.gmra.mxu1 %v236_v61 }
 0x17b   :  { %361 = vmatmul.f32.gmra.mxu2 %v252_v62 }
 0x17d   :  { %299 = vmatmul.f32.gmra.mxu1 %v237_v63 }
 0x183   :  { %364 = vmatmul.f32.gmra.mxu2 %v253_v0 }
 0x185   :  { %302 = vmatmul.f32.gmra.mxu1 %v238_v1 }
 0x18b   :  { %367 = vmatmul.f32.gmra.mxu2 %v254_v2 }
 0x18d   :  { %305 = vmatmul.f32.gmra.mxu1 %v239_v3 }
 0x193   :  { %370 = vmatmul.f32.gmra.mxu2 %v255_v4 }
 0x195   :  { %308 = vmatmul.f32.gmra.mxu1 %v240_v5 }
 0x19b   :  { %373 = vmatmul.f32.gmra.mxu2 %v256_v6 }
 0x19d   :  { %311 = vmatmul.f32.gmra.mxu1 %v241_v7 }
 0x1a3   :  { %376 = vmatmul.f32.gmra.mxu2 %v257_v8 }
 0x1a5   :  { %314 = vmatmul.f32.gmra.mxu1 %v242_v9 }
 0x1ab   :  { %379 = vmatmul.f32.gmra.mxu2 %v258_v10 }
 0x1ad   :  { %317 = vmatmul.f32.gmra.mxu1 %v243_v11 }
 0x1b3   :  { %382 = vmatmul.f32.gmra.mxu2 %v259_v12 }
 0x1b5   :  { %320 = vmatmul.f32.gmra.mxu1 %v244_v13 }
 0x1bb   :  { %385 = vmatmul.f32.gmra.mxu2 %v260_v14 }
 0x1bd   :  { %323 = vmatmul.f32.gmra.mxu1 %v245_v15 }
 0x1c2   :  { %v279_v17 = vpop.f32.mrf.mxu1 }
 0x1c3   :  { %388 = vmatmul.f32.gmra.mxu2 %v261_v16  ;;  %492 = vst [vmem:[#allocation8] sm:$0xff] %v279_v17 }
 0x1ca   :  { %v282_v18 = vpop.f32.mrf.mxu1 }
 0x1cb   :  { %493 = vst [vmem:[#allocation8 + $0x8] sm:$0xff] %v282_v18 }
 0x1ce   :  { %v344_v19 = vpop.f32.mrf.mxu2 }
 0x1cf   :  { %508 = vst [vmem:[#allocation8 + $0x80] sm:$0xff] %v344_v19 }
 0x1d2   :  { %v285_v20 = vpop.f32.mrf.mxu1 }
 0x1d3   :  { %494 = vst [vmem:[#allocation8 + $0x10] sm:$0xff] %v285_v20 }
 0x1d6   :  { %v347_v21 = vpop.f32.mrf.mxu2 }
 0x1d7   :  { %509 = vst [vmem:[#allocation8 + $0x88] sm:$0xff] %v347_v21 }
 0x1da   :  { %v288_v22 = vpop.f32.mrf.mxu1 }
 0x1db   :  { %495 = vst [vmem:[#allocation8 + $0x18] sm:$0xff] %v288_v22 }
 0x1de   :  { %v350_v23 = vpop.f32.mrf.mxu2 }
 0x1df   :  { %510 = vst [vmem:[#allocation8 + $0x90] sm:$0xff] %v350_v23 }
 0x1e2   :  { %v291_v24 = vpop.f32.mrf.mxu1 }
 0x1e3   :  { %496 = vst [vmem:[#allocation8 + $0x20] sm:$0xff] %v291_v24 }
 0x1e6   :  { %v353_v25 = vpop.f32.mrf.mxu2 }
 0x1e7   :  { %511 = vst [vmem:[#allocation8 + $0x98] sm:$0xff] %v353_v25 }
 0x1ea   :  { %v294_v26 = vpop.f32.mrf.mxu1 }
 0x1eb   :  { %497 = vst [vmem:[#allocation8 + $0x28] sm:$0xff] %v294_v26 }
 0x1ee   :  { %v356_v27 = vpop.f32.mrf.mxu2 }
 0x1ef   :  { %512 = vst [vmem:[#allocation8 + $0xa0] sm:$0xff] %v356_v27 }
 0x1f2   :  { %v297_v28 = vpop.f32.mrf.mxu1 }
 0x1f3   :  { %498 = vst [vmem:[#allocation8 + $0x30] sm:$0xff] %v297_v28 }
 0x1f6   :  { %v359_v29 = vpop.f32.mrf.mxu2 }
 0x1f7   :  { %513 = vst [vmem:[#allocation8 + $0xa8] sm:$0xff] %v359_v29 }
 0x1fa   :  { %v300_v30 = vpop.f32.mrf.mxu1 }
 0x1fb   :  { %499 = vst [vmem:[#allocation8 + $0x38] sm:$0xff] %v300_v30 }
 0x1fe   :  { %v362_v31 = vpop.f32.mrf.mxu2 }
 0x1ff   :  { %514 = vst [vmem:[#allocation8 + $0xb0] sm:$0xff] %v362_v31 }
 0x202   :  { %v303_v32 = vpop.f32.mrf.mxu1 }
 0x203   :  { %500 = vst [vmem:[#allocation8 + $0x40] sm:$0xff] %v303_v32 }
 0x206   :  { %v365_v33 = vpop.f32.mrf.mxu2 }
 0x207   :  { %515 = vst [vmem:[#allocation8 + $0xb8] sm:$0xff] %v365_v33 }
 0x20a   :  { %v306_v34 = vpop.f32.mrf.mxu1 }
 0x20b   :  { %501 = vst [vmem:[#allocation8 + $0x48] sm:$0xff] %v306_v34 }
 0x20e   :  { %v368_v35 = vpop.f32.mrf.mxu2 }
 0x20f   :  { %516 = vst [vmem:[#allocation8 + $0xc0] sm:$0xff] %v368_v35 }
 0x212   :  { %v309_v36 = vpop.f32.mrf.mxu1 }
 0x213   :  { %502 = vst [vmem:[#allocation8 + $0x50] sm:$0xff] %v309_v36 }
 0x216   :  { %v371_v37 = vpop.f32.mrf.mxu2 }
 0x217   :  { %517 = vst [vmem:[#allocation8 + $0xc8] sm:$0xff] %v371_v37 }
 0x21a   :  { %v312_v38 = vpop.f32.mrf.mxu1 }
 0x21b   :  { %503 = vst [vmem:[#allocation8 + $0x58] sm:$0xff] %v312_v38 }
 0x21e   :  { %v374_v39 = vpop.f32.mrf.mxu2 }
 0x21f   :  { %518 = vst [vmem:[#allocation8 + $0xd0] sm:$0xff] %v374_v39 }
 0x222   :  { %v315_v40 = vpop.f32.mrf.mxu1 }
 0x223   :  { %504 = vst [vmem:[#allocation8 + $0x60] sm:$0xff] %v315_v40 }
 0x226   :  { %v377_v41 = vpop.f32.mrf.mxu2 }
 0x227   :  { %519 = vst [vmem:[#allocation8 + $0xd8] sm:$0xff] %v377_v41 }
 0x22a   :  { %v318_v42 = vpop.f32.mrf.mxu1 }
 0x22b   :  { %505 = vst [vmem:[#allocation8 + $0x68] sm:$0xff] %v318_v42 }
 0x22e   :  { %v380_v43 = vpop.f32.mrf.mxu2 }
 0x22f   :  { %520 = vst [vmem:[#allocation8 + $0xe0] sm:$0xff] %v380_v43 }
 0x232   :  { %v321_v44 = vpop.f32.mrf.mxu1 }
 0x233   :  { %506 = vst [vmem:[#allocation8 + $0x70] sm:$0xff] %v321_v44 }
 0x236   :  { %v383_v45 = vpop.f32.mrf.mxu2 }
 0x237   :  { %521 = vst [vmem:[#allocation8 + $0xe8] sm:$0xff] %v383_v45 }
 0x23a   :  { %v324_v46 = vpop.f32.mrf.mxu1 }
 0x23b   :  { %507 = vst [vmem:[#allocation8 + $0x78] sm:$0xff] %v324_v46 }
 0x23e   :  { %v386_v47 = vpop.f32.mrf.mxu2 }
 0x23f   :  { %522 = vst [vmem:[#allocation8 + $0xf0] sm:$0xff] %v386_v47 }
 0x246   :  { %v389_v50 = vpop.f32.mrf.mxu2 }
 0x247   :  { %523 = vst [vmem:[#allocation8 + $0xf8] sm:$0xff] %v389_v50 }
 0x248   :  { %536 = dma.vmem_to_hbm [thread:$0]  %s529_s5, 4096, %s531_s8, [#allocation4], %s671_s23, %s671_s23, %s672_s24  }
 0x249   :  { %668 = dma.done.wait [#allocation4], 4096  }
 0x24a   :  { %669 = vsyncadd [#allocation4], 4294963200 }
 0x24b   :  { %541 = vsyncpa [#allocation3], 1 }
 0x24c   :  { %542 = vsyncpa [#allocation6], 1 }
 0x24d   :  { %543 = vsyncpa [#allocation4], 1 }

</bundles_post_ra>
